<compile_context>
chip_gen: v5e
topology: v5e:2x2
jax: 0.10.0
libtpu: 0.0.40
codegen_flags: <defaults>
</compile_context>

<pallas_src>
import functools

import jax
import jax.numpy as jnp
from jax.experimental import pallas as pl
from jax.experimental.pallas import tpu as pltpu


def temporal_shift_kernel(x_ref, o_ref, *, fold):
    """Block shape (tile_b, T, c_blk, tile_hw); `fold` is a static Python int."""
    tb, T, c_blk, thw = o_ref.shape
    zero = jnp.zeros((tb, 1, fold, thw), dtype=o_ref.dtype)

    # Channels [:fold]: out[t] = x[t+1]  (last frame zeroed).
    o_ref[:, :T - 1, :fold, :] = x_ref[:, 1:, :fold, :]
    o_ref[:, T - 1:, :fold, :] = zero

    # Channels [fold:2*fold]: out[t] = x[t-1]  (first frame zeroed).
    o_ref[:, 1:, fold:2 * fold, :] = x_ref[:, :T - 1, fold:2 * fold, :]
    o_ref[:, :1, fold:2 * fold, :] = zero

    # Sublane-padding channels inside the block (present when 2*fold was
    # rounded up to a sublane multiple, or when the block spans all of C):
    # copy through so the aliased output keeps pass-through values for them.
    if 2 * fold < c_blk:
        o_ref[:, :, 2 * fold:, :] = x_ref[:, :, 2 * fold:, :]


def _round_up(x, m):
    return (x + m - 1) // m * m


def _cdiv(a, b):
    return -(-a // b)


def _vmem_profile():
    """Return (vmem_capacity_bytes, block_budget_bytes, prefer_even_steps)."""
    vmem_cap = 64 * 1024 * 1024          # conservative fallback (v7x per-TC VMEM)
    try:
        vmem_cap = int(pltpu.get_tpu_info().vmem_capacity_bytes)
    except Exception:
        pass
    # v7x: 64 MiB VMEM per TC, 2 TCs/chip.  v5e/v6e: 128 MiB, 1 TC.
    two_tensorcores = vmem_cap < 100 * 1024 * 1024
    budget = (24 if two_tensorcores else 48) * 1024 * 1024
    return vmem_cap, budget, two_tensorcores


def _pick_tiles(n_batch, n_segment, c_blk, hw, itemsize, budget, prefer_even_steps):
    """Pick (tile_b, tile_hw) so in+out double-buffered blocks fit the budget."""

    def block_bytes(tb, thw):
        return tb * n_segment * c_blk * thw * itemsize

    def fits(tb, thw):
        return 4 * block_bytes(tb, thw) <= budget   # in + out, double-buffered

    # Lane (H*W) tile: full extent, or a multiple of 128 (cdiv grid, ragged
    # last block allowed).  Largest candidate that fits the budget at tile_b=1.
    if hw <= 128:
        lane_cands = [hw]
    elif hw % 128 == 0:
        lane_cands = list(range(hw, 0, -128))
    else:
        lane_cands = [hw] + list(range((hw // 128) * 128, 0, -128))
    tile_hw = lane_cands[-1]
    for thw in lane_cands:
        if fits(1, thw):
            tile_hw = thw
            break
    hw_steps = _cdiv(hw, tile_hw)

    # Batch tile: largest divisor of n_batch that fits; on 2-TC chips prefer a
    # choice giving an even (>= 2) total step count so both cores stay busy.
    divisors = [d for d in range(n_batch, 0, -1) if n_batch % d == 0]
    fitting = [d for d in divisors if fits(d, tile_hw)] or [1]

    def steps(tb):
        return (n_batch // tb) * hw_steps

    if prefer_even_steps:
        even = [d for d in fitting if steps(d) >= 2 and steps(d) % 2 == 0]
        multi = [d for d in fitting if steps(d) >= 2]
        tile_b = (even or multi or fitting)[0]
    else:
        tile_b = fitting[0]
    return tile_b, tile_hw


def temporal_shift(x, n_segment=3, n_div=8, *, block_budget_bytes=None):
    """TSM temporal shift.  x: (NT, C, H, W) in NCHW, NT = n_batch * n_segment."""
    nt, c, h, w = x.shape
    if nt % n_segment != 0:
        raise ValueError("NT must be divisible by n_segment")
    if n_segment < 2:
        raise ValueError("n_segment must be >= 2")
    fold = c // n_div
    if fold < 1:
        raise ValueError(f"TSM needs C ({c}) >= n_div ({n_div})")

    n_batch = nt // n_segment
    hw = h * w
    xr = x.reshape(n_batch, n_segment, c, hw)

    itemsize = x.dtype.itemsize
    sublane = max(1, 32 // itemsize)                 # 8 f32 / 16 bf16 / 32 int8
    c_blk = min(c, _round_up(2 * fold, sublane))     # shifted band, sublane-aligned

    vmem_cap, budget, prefer_even = _vmem_profile()
    if block_budget_bytes is not None:
        budget = block_budget_bytes
    tile_b, tile_hw = _pick_tiles(n_batch, n_segment, c_blk, hw,
                                  itemsize, budget, prefer_even)
    grid = (n_batch // tile_b, _cdiv(hw, tile_hw))
    block = (tile_b, n_segment, c_blk, tile_hw)

    block_bytes = tile_b * n_segment * c_blk * tile_hw * itemsize
    vmem_limit = int(min(max(4 * block_bytes + 2 * 1024 * 1024, 8 * 1024 * 1024),
                         vmem_cap))

    out = pl.pallas_call(
        functools.partial(temporal_shift_kernel, fold=fold),
        out_shape=jax.ShapeDtypeStruct(xr.shape, xr.dtype),
        grid_spec=pltpu.PrefetchScalarGridSpec(
            num_scalar_prefetch=0,
            grid=grid,
            in_specs=[pl.BlockSpec(block, lambda b, s: (b, 0, 0, s))],
            out_specs=pl.BlockSpec(block, lambda b, s: (b, 0, 0, s)),
        ),
        # Output aliases the input: channels the kernel never touches keep
        # their input values (pass-through) without crossing HBM<->VMEM.
        input_output_aliases={0: 0},
        compiler_params=pltpu.CompilerParams(
            dimension_semantics=("parallel", "parallel"),
            vmem_limit_bytes=vmem_limit,
        ),
    )(xr)

    return out.reshape(nt, c, h, w)


def temporal_shift_module_forward(x, n_segment=3, n_div=8):
    """Equivalent of TemporalShift.forward with net = identity."""
    shifted = temporal_shift(x, n_segment=n_segment, n_div=n_div)
    # TODO(synk): `self.net` is an arbitrary wrapped sub-module supplied at
    # construction; modeled as identity here (shift should be fused into it).
    return shifted


def _reference_shift(x, n_segment, n_div):
    nt, c, h, w = x.shape
    n_batch = nt // n_segment
    xv = x.reshape(n_batch, n_segment, c, h, w)
    fold = c // n_div
    out = jnp.zeros_like(xv)
    out = out.at[:, :-1, :fold].set(xv[:, 1:, :fold])
    out = out.at[:, 1:, fold:2 * fold].set(xv[:, :-1, fold:2 * fold])
    out = out.at[:, :, 2 * fold:].set(xv[:, :, 2 * fold:])
    return out.reshape(nt, c, h, w)


if __name__ == "__main__":
    key = jax.random.PRNGKey(0)

    # Config A: module defaults (n_segment=3, n_div=8), small shapes, eager call
    # (XLA inserts a copy for the non-donated aliased operand; values correct).
    n_segment, n_div = 3, 8
    n_batch, C, H, W = 2, 8, 16, 16
    x = jax.random.normal(key, (n_batch * n_segment, C, H, W), dtype=jnp.float32)
    y = jax.block_until_ready(
        temporal_shift_module_forward(x, n_segment=n_segment, n_div=n_div))
    y_ref = _reference_shift(x, n_segment, n_div)
    assert y.shape == x.shape and y.dtype == x.dtype
    assert jnp.allclose(y, y_ref, atol=1e-6, rtol=1e-6), "config A mismatch"

    # Config B: sublane-aligned fold (C=64 -> fold=8, shifted band = 16 chans),
    # ResNet-style 14x14 map (hw=196, no 128-multiple divisor -> full-hw lane
    # block), input donated under jit so the alias is realized copy-free.
    n_segment2, n_div2 = 4, 8
    n_batch2, C2, H2, W2 = 2, 64, 14, 14
    x2 = jax.random.normal(jax.random.fold_in(key, 1),
                           (n_batch2 * n_segment2, C2, H2, W2), dtype=jnp.float32)
    y2_ref = _reference_shift(x2, n_segment2, n_div2)
    shift_b = jax.jit(
        functools.partial(temporal_shift, n_segment=n_segment2, n_div=n_div2),
        donate_argnums=0)
    y2 = jax.block_until_ready(shift_b(x2))
    assert jnp.allclose(y2, y2_ref, atol=1e-6, rtol=1e-6), "config B mismatch"

    # Config C: force the multi-tile grid path (batch x hw tiling) with a small
    # explicit block budget: C=16 -> shifted band rounded up to 8 channels,
    # hw=1024 -> tile_hw=512, grid=(2, 2).
    n_segment3, n_div3 = 3, 8
    n_batch3, C3, H3, W3 = 2, 16, 32, 32
    x3 = jax.random.normal(jax.random.fold_in(key, 2),
                           (n_batch3 * n_segment3, C3, H3, W3), dtype=jnp.float32)
    y3 = jax.block_until_ready(
        temporal_shift(x3, n_segment=n_segment3, n_div=n_div3,
                       block_budget_bytes=200 * 1024))
    y3_ref = _reference_shift(x3, n_segment3, n_div3)
    assert jnp.allclose(y3, y3_ref, atol=1e-6, rtol=1e-6), "config C mismatch"

    print("KERNEL_OK")
</pallas_src>

<mosaic_0001>
module attributes {stable_mosaic.version = 11 : i64} {
  func.func @temporal_shift_kernel(%arg0: i32, %arg1: i32, %arg2: memref<1x3x8x256xf32, #tpu.memory_space<vmem>>, %arg3: memref<1x3x8x256xf32, #tpu.memory_space<vmem>>) attributes {dimension_semantics = [#tpu.dimension_semantics<parallel>, #tpu.dimension_semantics<parallel>], iteration_bounds = array<i64: 2, 1>, scalar_prefetch = 0 : i64, scratch_operands = 0 : i64, tpu.core_type = #tpu.core_type<tc>, window_params = [{transform_indices = @transform_0, window_bounds = array<i64: 1, 3, 8, 256>}, {transform_indices = @transform_1, window_bounds = array<i64: 1, 3, 8, 256>}]} {
    %cst = arith.constant 0.000000e+00 : f32
    %0 = vector.broadcast %cst : f32 to vector<1x1x1x256xf32>
    %c0 = arith.constant 0 : index
    %c1 = arith.constant 1 : index
    %c0_0 = arith.constant 0 : index
    %c0_1 = arith.constant 0 : index
    %1 = vector.load %arg2[%c0, %c1, %c0_0, %c0_1] : memref<1x3x8x256xf32, #tpu.memory_space<vmem>>, vector<1x2x1x256xf32>
    %c0_2 = arith.constant 0 : index
    %c0_3 = arith.constant 0 : index
    %c0_4 = arith.constant 0 : index
    %c0_5 = arith.constant 0 : index
    %2 = vector.load %arg3[%c0_2, %c0_3, %c0_4, %c0_5] : memref<1x3x8x256xf32, #tpu.memory_space<vmem>>, vector<1x2x1x256xf32>
    tpu.vector_store %arg3[%c0_2, %c0_3, %c0_4, %c0_5], %1 {strides = array<i32>} : memref<1x3x8x256xf32, #tpu.memory_space<vmem>>, vector<1x2x1x256xf32>,
    %c0_6 = arith.constant 0 : index
    %c2 = arith.constant 2 : index
    %c0_7 = arith.constant 0 : index
    %c0_8 = arith.constant 0 : index
    %3 = vector.load %arg3[%c0_6, %c2, %c0_7, %c0_8] : memref<1x3x8x256xf32, #tpu.memory_space<vmem>>, vector<1x1x1x256xf32>
    tpu.vector_store %arg3[%c0_6, %c2, %c0_7, %c0_8], %0 {strides = array<i32>} : memref<1x3x8x256xf32, #tpu.memory_space<vmem>>, vector<1x1x1x256xf32>,
    %c0_9 = arith.constant 0 : index
    %c0_10 = arith.constant 0 : index
    %c1_11 = arith.constant 1 : index
    %c0_12 = arith.constant 0 : index
    %4 = vector.load %arg2[%c0_9, %c0_10, %c1_11, %c0_12] : memref<1x3x8x256xf32, #tpu.memory_space<vmem>>, vector<1x2x1x256xf32>
    %c0_13 = arith.constant 0 : index
    %c1_14 = arith.constant 1 : index
    %c1_15 = arith.constant 1 : index
    %c0_16 = arith.constant 0 : index
    %5 = vector.load %arg3[%c0_13, %c1_14, %c1_15, %c0_16] : memref<1x3x8x256xf32, #tpu.memory_space<vmem>>, vector<1x2x1x256xf32>
    tpu.vector_store %arg3[%c0_13, %c1_14, %c1_15, %c0_16], %4 {strides = array<i32>} : memref<1x3x8x256xf32, #tpu.memory_space<vmem>>, vector<1x2x1x256xf32>,
    %c0_17 = arith.constant 0 : index
    %c0_18 = arith.constant 0 : index
    %c1_19 = arith.constant 1 : index
    %c0_20 = arith.constant 0 : index
    %6 = vector.load %arg3[%c0_17, %c0_18, %c1_19, %c0_20] : memref<1x3x8x256xf32, #tpu.memory_space<vmem>>, vector<1x1x1x256xf32>
    tpu.vector_store %arg3[%c0_17, %c0_18, %c1_19, %c0_20], %0 {strides = array<i32>} : memref<1x3x8x256xf32, #tpu.memory_space<vmem>>, vector<1x1x1x256xf32>,
    %c0_21 = arith.constant 0 : index
    %c0_22 = arith.constant 0 : index
    %c2_23 = arith.constant 2 : index
    %c0_24 = arith.constant 0 : index
    %7 = vector.load %arg2[%c0_21, %c0_22, %c2_23, %c0_24] : memref<1x3x8x256xf32, #tpu.memory_space<vmem>>, vector<1x3x6x256xf32>
    %c0_25 = arith.constant 0 : index
    %c0_26 = arith.constant 0 : index
    %c2_27 = arith.constant 2 : index
    %c0_28 = arith.constant 0 : index
    %8 = vector.load %arg3[%c0_25, %c0_26, %c2_27, %c0_28] : memref<1x3x8x256xf32, #tpu.memory_space<vmem>>, vector<1x3x6x256xf32>
    tpu.vector_store %arg3[%c0_25, %c0_26, %c2_27, %c0_28], %7 {strides = array<i32>} : memref<1x3x8x256xf32, #tpu.memory_space<vmem>>, vector<1x3x6x256xf32>,
    return
  }
  func.func @transform_0(%arg0: i32, %arg1: i32) -> (i32, i32, i32, i32) {
    %c0_i32 = arith.constant 0 : i32
    %c0_i32_0 = arith.constant 0 : i32
    %c0_i32_1 = arith.constant 0 : i32
    return %arg0, %c0_i32, %c0_i32_0, %arg1 : i32, i32, i32, i32
  }
  func.func @transform_1(%arg0: i32, %arg1: i32) -> (i32, i32, i32, i32) {
    %c0_i32 = arith.constant 0 : i32
    %c0_i32_0 = arith.constant 0 : i32
    %c0_i32_1 = arith.constant 0 : i32
    return %arg0, %c0_i32, %c0_i32_0, %arg1 : i32, i32, i32, i32
  }
}

</mosaic_0001>

<bundles_post_ra>
// kernel: tpu_custom_call.1
= control target key start
LH: loop header
LB: loop body
LE: loop exit
PB: predicated region body
PF: predicated region fallthrough
CT: control target
= control target key end

     0   :  { %6 = vsyncpa [#allocation3], 0  ;;  %s645_s0 = inlined_call_operand.hbm [shape: f32[2,3,8,256], index: 0, kind: input, shape index: {}, may-alias: {0,1}]   ;;  %s646_s1 = inlined_call_operand.hbm [shape: f32[2,3,8,256], index: 1, kind: output, shape index: {}, may-alias: {0,1}]  }
   0x1   :  { %8 = vsyncpa [#allocation3 + $0x1], 0 }
   0x2   :  { %9 = vsyncpa [#allocation4], 0 }
   0x3   :  { %11 = vsyncpa [#allocation4 + $0x1], 0  ;;  %s525_s6 = smov 0   ;;  %s527_s7 = smov 0  }
   0x4   :  { %s529_s8 = smov 0   ;;  %s531_s9 = smov 0  }
   0x5   :  { %s533_s10 = smov 0   ;;  %s535_s11 = smov 0  }
   0x6 LB: > { %s307_s12 = sadd.s32 4294967295, %s508_s11   ;;  %s308_s13 = sadd.s32 4294967294, %s508_s11   ;;  %s508_s11 = sphi %s535_s11, %s17_s11   ;;  %s504_s10 = sphi %s533_s10, %s655_s10   ;;  %s500_s9 = sphi %s531_s9, %s654_s9   ;;  %s496_s8 = sphi %s529_s8, %s653_s8   ;;  %s492_s7 = sphi %s527_s7, %s652_s7   ;;  %s488_s6 = sphi %s525_s6, %s651_s6  }
   0x7   : > { %s29_s14 = sadd.s32 1, %s504_s10  ;;  %s38_s15 = sadd.s32 1, %s496_s8 }
   0x8   : > { %p31_p0 = scmp.ge.s32.totalorder %s29_s14, 2  ;;  %p45_p1 = scmp.ne.s32.totalorder %s496_s8, %s492_s7 }
   0x9   : > { %p46_p2 = scmp.eq.s32.totalorder %s508_s11, 0  ;;  %p51_p3 = scmp.ne.s32.totalorder %s492_s7, %s488_s6 }
   0xa   : > { %s657_s14 = smov (%p31_p0, %s29_s14), 0  ;;  %p52_p5 = scmp.eq.s32.totalorder %s307_s12, 0 }
   0xb   : > { %p566_p4 = por %p46_p2, %p45_p1  ;;  %s33_s17 = ssub.s32 %s504_s10, %s657_s14 }
   0xc   : > { %p77_p6 = scmp.eq.s32.totalorder %s307_s12, 1  ;;  %p36_p7 = scmp.eq.s32.totalorder %s33_s17, 0 }
   0xd   : > { %p572_p8 = por %p52_p5, %p51_p3  ;;  %p83_p10 = scmp.eq.s32.totalorder %s308_s13, 1 }
   0xe   : > { %p576_p9 = por %p77_p6, %p45_p1  ;;  %p310_p12 = scmp.ge.s32.totalorder %s508_s11, 2 }
   0xf   : > { %s581_s20 = scalar_select %p36_p7, %s496_s8, %s38_s15  }
  0x10   : > { %p583_p11 = por %p83_p10, %p51_p3  ;;  %p341_p13 = scmp.lt.s32.totalorder %s508_s11, 2 }
  0x11   : > { %s103_s22 = sand.u32 1, %s496_s8   ;;  %s326_s24 = smul.u32 48, %s504_s10 }
  0x12   : > { %s325_s23 = smul.u32 48, %s103_s22  ;;  %p334_p0 = pnand %p341_p13, %p566_p4 }
  0x13   : > { %s114_s27 = scalar_lea.hbm %s645_s0, %s326_s24  ;;  %p312_p1 = scmp.ge.s32.totalorder %s508_s11, 1 }
  0x14   : > { %s107_s28 = scalar_lea.vmem [#allocation2], %s325_s23  ;;  %s115_s30 = sshll.u32 %s114_s27, 4  ;;  %s116_s30 = int_to_ptr.hbm [resolvable:$true] %s115_s30 }
  0x15   : > { %s117_s29 = sshll.u32 %s107_s28, 4  ;;  %s104_s2 = scalar_lea.sflag [#allocation3], %s103_s22  ;;  %s118_s29 = int_to_ptr.vmem [resolvable:$true] %s117_s29 }
  0x16   : > { %s510_s3 = smov 256   ;;  %s511_s4 = smov 16  }
  0x17   : > { %336 = dma.hbm_to_vmem [thread:$0]  (!%p334_p0), %s116_s30, 768, %s118_s29, %s104_s2, %s510_s3, %s510_s3, %s511_s4  }
  0x18   : > { %p125_p2 = scmp.lt.s32.totalorder %s508_s11, 3 }
  0x1a   : > { %p126_p3 = pnand %p312_p1, %p125_p2 }
  0x1b   : > { %s599_s5 = sand.u32 (!%p126_p3), 1, %s492_s7  }
  0x1c   : > { %129 = sbr.rel (%p126_p3) target bundleno = 54 (0x36), region = 24  ;;  %s132_s13 = scalar_lea.sflag (!%p126_p3), [#allocation3], %s599_s5 }
  0x1d   : > { %s327_s12 = smul.u32 (!%p126_p3), 48, %s599_s5 }
  0x1f   : > { %s135_s15 = scalar_lea.vmem (!%p126_p3), [#allocation2], %s327_s12 }
  0x21   : > { %479 = dma.done.wait (%p572_p8), %s132_s13, 768  }
  0x22   : > { %481 = vsyncadd (%p572_p8), %s132_s13, 4294966528  ;;  %v161_v0 = vlaneseq  ;;  %s154_s16 = scalar_lea.vmem [#allocation5], %s327_s12  ;;  %v512_v1 = vmov 0.0   ;;  %s328_s17 = smul.u32 48, %s500_s9  ;;  %v187_v6 = vld [vmem:[%s135_s15] sm:$0xfc] }
  0x23   : > { %v313_v2 = vld [vmem:[%s135_s15 + $0x10] ss:$8 sm:$0x3]  ;;  %v314_v3 = vld [vmem:[%s135_s15 + $0x20] ss:$8 sm:$0x3] }
  0x24   : > { %vm163_vm0 = vcmp.lt.s32.totalorder %v161_v0, 256  ;;  %v317_v4 = vld [vmem:[%s135_s15 + $0x1] ss:$8 sm:$0x3]  ;;  %s213_s24 = scalar_lea.hbm %s646_s1, %s328_s17  ;;  %v188_v7 = vld [vmem:[%s135_s15 + $0x8] sm:$0xfc] }
  0x25   : > { %316 = vst.msk [vmem:[%s154_s16 + $0x20] ss:$8 sm:$0x3] %vm163_vm0, %v512_v1  ;;  %v318_v5 = vld [vmem:[%s135_s15 + $0x11] ss:$8 sm:$0x3] }
  0x26   : > { %321 = vst.msk [vmem:[%s154_s16 + $0x1] ss:$8 sm:$0x3] %vm163_vm0, %v512_v1  ;;  %s214_s18 = sshll.u32 %s154_s16, 4  ;;  %v189_v8 = vld [vmem:[%s135_s15 + $0x10] sm:$0xfc]  ;;  %s215_s18 = int_to_ptr.vmem [resolvable:$true] %s214_s18 }
  0x27   : > { %165 = vst.msk [vmem:[%s154_s16] ss:$8 sm:$0x3] %vm163_vm0, %v313_v2  ;;  %v190_v9 = vld [vmem:[%s135_s15 + $0x18] sm:$0xfc]  ;;  %s216_s9 = sshll.u32 %s213_s24, 4  ;;  %s217_s9 = int_to_ptr.hbm [resolvable:$true] %s216_s9 }
  0x28   : > { %315 = vst.msk [vmem:[%s154_s16 + $0x10] ss:$8 sm:$0x3] %vm163_vm0, %v314_v3  ;;  %v191_v10 = vld [vmem:[%s135_s15 + $0x20] sm:$0xfc]  ;;  %s200_s25 = scalar_lea.sflag [#allocation4], %s599_s5 }
  0x29   : > { %319 = vst.msk [vmem:[%s154_s16 + $0x11] ss:$8 sm:$0x3] %vm163_vm0, %v317_v4  ;;  %v192_v11 = vld [vmem:[%s135_s15 + $0x28] sm:$0xfc]  ;;  %s440_s26 = sshra.s32 %s217_s9, 4  ;;  %s441_s26 = int_to_ptr.hbm [resolvable:$true] %s440_s26 }
  0x2a   : > { %320 = vst.msk [vmem:[%s154_s16 + $0x21] ss:$8 sm:$0x3] %vm163_vm0, %v318_v5  ;;  %s442_s27 = scalar_lea.hbm %s441_s26, 48  ;;  %s446_s30 = scalar_lea.hbm %s646_s1, 96 }
  0x2b   : > { %193 = vst [vmem:[%s154_s16] sm:$0xfc] %v187_v6  ;;  %p443_p4 = scmp.ne.s32.totalorder %s441_s26, %s442_s27  ;;  %p447_p7 = scmp.lt.s32.totalorder %s441_s26, %s646_s1 }
  0x2c   : > { %194 = vst [vmem:[%s154_s16 + $0x8] sm:$0xfc] %v188_v7  ;;  %p448_p8 = scmp.lt.s32.totalorder %s446_s30, %s442_s27 }
  0x2d   : > { %195 = vst [vmem:[%s154_s16 + $0x10] sm:$0xfc] %v189_v8  ;;  %p444_p5 = pnand %p443_p4, %p576_p9 }
  0x2e   : > { %196 = vst [vmem:[%s154_s16 + $0x18] sm:$0xfc] %v190_v9  ;;  %p449_p10 = por %p448_p8, %p447_p7 }
  0x2f   : > { %197 = vst [vmem:[%s154_s16 + $0x20] sm:$0xfc] %v191_v10  ;;  %p445_p6 = pneg %p444_p5 }
  0x30   : > { %198 = vst [vmem:[%s154_s16 + $0x28] sm:$0xfc] %v192_v11 }
  0x31   : > { %p450_p13 = pnand %p449_p10, %p445_p6 }
  0x33   : > { %453 = shalt.err (!%p450_p13)
}
  0x34   : > { %s513_s4 = smov 256   ;;  %s514_s5 = smov 16  }
  0x35   : > { %331 = dma.vmem_to_hbm [thread:$0]  (%p576_p9), %s215_s18, 768, %s217_s9, %s200_s25, %s513_s4, %s513_s4, %s514_s5  }
  0x36 PF: > { %s231_s12 = sand.u32 1, %s488_s6   ;;  %p338_p0 = pnand %p310_p12, %p583_p11 }
  0x37   : > { %s232_s13 = scalar_lea.sflag [#allocation4], %s231_s12 }
  0x38   : > { %p339_p1 = pneg %p338_p0 }
  0x3a   : > { %483 = dma.done.wait (%p339_p1), %s232_s13, 768  }
  0x3b   : > { %485 = vsyncadd (%p339_p1), %s232_s13, 4294966528  ;;  %s17_s11 = sadd.s32 1, %s508_s11   ;;  %s651_s6 = smov %s492_s7 }
  0x3c   : > { %p14_p2 = scmp.ge.s32.totalorder %s17_s11, 4   ;;  %s652_s7 = smov %s496_s8 }
  0x3d   : > { %s653_s8 = smov %s581_s20  ;;  %s654_s9 = smov %s504_s10 }
  0x3e   : > { %s655_s10 = smov %s657_s14  ;;  %16 = sbr.rel (!%p14_p2) target bundleno = 6 (0x6), region = 79 }
  0x43   :  { %238 = vsyncpa [#allocation3], 1 }
  0x44   :  { %240 = vsyncpa [#allocation3 + $0x1], 1 }
  0x45   :  { %241 = vsyncpa [#allocation4], 1 }
  0x46   :  { %243 = vsyncpa [#allocation4 + $0x1], 1 }

</bundles_post_ra>
